<compile_context>
chip_gen: v5e
topology: v5e:2x2
jax: 0.10.0
libtpu: 0.0.40
codegen_flags: <defaults>
</compile_context>

<pallas_src>
import functools

import jax
import jax.numpy as jnp
from jax.experimental import pallas as pl
from jax.experimental.pallas import tpu as pltpu


def _cross_en_kernel(x_ref, out_ref, *, n_total, mask_rows):
    """One row tile: per-row (lse - diag) written to the (TM, 1) output block.

    x_ref  : (TM, N)  row slab of the similarity matrix
    out_ref: (TM, 1)  per-row loss  (-log p_ii = lse_i - sim_ii)
    """
    i = pl.program_id(0)
    tm = x_ref.shape[0]

    x = x_ref[...].astype(jnp.float32)                              # (TM, N)

    # Row-wise log-sum-exp in f32 (numerically stable).
    row_max = jnp.max(x, axis=-1, keepdims=True)                    # (TM, 1)
    sum_exp = jnp.sum(jnp.exp(x - row_max), axis=-1, keepdims=True)  # (TM, 1)
    lse = row_max + jnp.log(sum_exp)                                 # (TM, 1)

    # Diagonal gather from the slab itself: element (r, c) is on the diagonal
    # iff global column c == global row i*TM + r.  Select (not multiply) keeps
    # inf/NaN garbage from polluting the sum.
    row_global = i * tm + jax.lax.broadcasted_iota(jnp.int32, (tm, 1), 0)
    col = jax.lax.broadcasted_iota(jnp.int32, x.shape, 1)            # (TM, N)
    diag = jnp.sum(jnp.where(col == row_global, x, 0.0),
                   axis=-1, keepdims=True)                           # (TM, 1)

    loss = lse - diag
    if mask_rows:
        # Padded rows of a partial last tile hold unspecified VMEM contents;
        # zero them so the wrapper's sum stays exact.
        loss = jnp.where(row_global < n_total, loss, 0.0)
    out_ref[...] = loss


def _pick_block_rows(n: int, itemsize: int) -> int:
    """Largest row tile (full N, else a multiple of 8) whose double-buffered
    (TM, N) input stream fits a conservative ~12 MiB VMEM budget."""
    budget = 12 * 1024 * 1024
    candidates = [n] + [t for t in (1024, 512, 256, 128, 64, 32, 16, 8) if t < n]
    for tm in candidates:
        if 2 * tm * n * itemsize <= budget:
            return tm
    return 8  # TODO(synk): N this large wants flash-style column tiling.


def cross_en(sim_matrix: jax.Array, block_rows: int | None = None) -> jax.Array:
    """Pallas implementation of CrossEn.forward; returns a scalar float32."""
    assert sim_matrix.ndim == 2 and sim_matrix.shape[0] == sim_matrix.shape[1], \
        "CrossEn expects a square [N, N] similarity matrix"
    n = sim_matrix.shape[0]
    itemsize = jnp.dtype(sim_matrix.dtype).itemsize
    tm = block_rows if block_rows is not None else _pick_block_rows(n, itemsize)
    tm = min(tm, n)
    num_tiles = pl.cdiv(n, tm)

    kernel = functools.partial(
        _cross_en_kernel, n_total=n, mask_rows=(n % tm != 0))

    per_row = pl.pallas_call(
        kernel,
        out_shape=jax.ShapeDtypeStruct((n, 1), jnp.float32),
        grid=(num_tiles,),
        in_specs=[
            # Row slab of the matrix (streamed, double-buffered).
            pl.BlockSpec((tm, n), lambda i: (i, 0)),
        ],
        out_specs=pl.BlockSpec((tm, 1), lambda i: (i, 0)),
        compiler_params=pltpu.CompilerParams(
            dimension_semantics=("parallel",)),  # megacore-shardable on v7x
        cost_estimate=pl.CostEstimate(
            flops=6 * n * n,
            transcendentals=n * n,
            bytes_accessed=n * n * itemsize + n * 4),
    )(sim_matrix)

    # Final mean over the N real rows (tiny XLA reduction).
    return jnp.sum(per_row) / n


def _cross_en_ref(sim_matrix: jax.Array) -> jax.Array:
    """Pure-JAX reference for correctness checking."""
    logpt = jax.nn.log_softmax(sim_matrix.astype(jnp.float32), axis=-1)
    return jnp.mean(-jnp.diag(logpt))


if __name__ == "__main__":
    key = jax.random.PRNGKey(0)

    # N=200, forced TM=128 -> grid=(2,) with a partial (masked) last tile.
    n = 200
    sim = jax.random.normal(key, (n, n), dtype=jnp.float32) * 4.0
    loss_tiled = cross_en(sim, block_rows=128)
    jax.block_until_ready(loss_tiled)
    ref = _cross_en_ref(sim)
    assert jnp.allclose(loss_tiled, ref, atol=1e-4, rtol=1e-4), (loss_tiled, ref)

    # Same input, default tile choice (single full block).
    loss_full = cross_en(sim)
    jax.block_until_ready(loss_full)
    assert jnp.allclose(loss_full, ref, atol=1e-4, rtol=1e-4), (loss_full, ref)

    # Single-block small case (typical tiny retrieval batch): N=8.
    sim_small = jax.random.normal(jax.random.PRNGKey(1), (8, 8),
                                  dtype=jnp.float32) * 4.0
    loss_small = cross_en(sim_small)
    jax.block_until_ready(loss_small)
    ref_small = _cross_en_ref(sim_small)
    assert jnp.allclose(loss_small, ref_small, atol=1e-4, rtol=1e-4), \
        (loss_small, ref_small)

    # bf16 input (halves HBM traffic); math still done in f32 in-kernel.
    sim_bf16 = sim.astype(jnp.bfloat16)
    loss_bf16 = cross_en(sim_bf16)
    jax.block_until_ready(loss_bf16)
    ref_bf16 = _cross_en_ref(sim_bf16)
    assert jnp.allclose(loss_bf16, ref_bf16, atol=1e-4, rtol=1e-4), \
        (loss_bf16, ref_bf16)

    print("KERNEL_OK")
</pallas_src>

<mosaic_0001>
module attributes {stable_mosaic.version = 11 : i64} {
  func.func @_cross_en_kernel(%arg0: i32, %arg1: memref<128x200xf32, #tpu.memory_space<vmem>>, %arg2: memref<128x1xf32, #tpu.memory_space<vmem>>) attributes {dimension_semantics = [#tpu.dimension_semantics<parallel>], iteration_bounds = array<i64: 2>, scalar_prefetch = 0 : i64, scratch_operands = 0 : i64, tpu.core_type = #tpu.core_type<tc>, window_params = [{transform_indices = @transform_0, window_bounds = array<i64: 128, 200>}, {transform_indices = @transform_1, window_bounds = array<i64: 128, 1>}]} {
    %c0 = arith.constant 0 : index
    %c0_0 = arith.constant 0 : index
    %0 = vector.load %arg1[%c0, %c0_0] : memref<128x200xf32, #tpu.memory_space<vmem>>, vector<128x200xf32>
    %cst = arith.constant dense<0xFF800000> : vector<128xf32>
    %1 = vector.multi_reduction <maximumf>, %0, %cst [1] : vector<128x200xf32> to vector<128xf32>
    %2 = vector.shape_cast %1 : vector<128xf32> to vector<128x1xf32>
    %3 = vector.broadcast %2 : vector<128x1xf32> to vector<128x200xf32>
    %4 = arith.subf %0, %3 : vector<128x200xf32>
    %5 = math.exp %4 : vector<128x200xf32>
    %cst_1 = arith.constant dense<0.000000e+00> : vector<128xf32>
    %6 = vector.multi_reduction <add>, %5, %cst_1 [1] : vector<128x200xf32> to vector<128xf32>
    %7 = vector.shape_cast %6 : vector<128xf32> to vector<128x1xf32>
    %8 = math.log %7 : vector<128x1xf32>
    %9 = arith.addf %2, %8 : vector<128x1xf32>
    %c128_i32 = arith.constant 128 : i32
    %10 = arith.muli %arg0, %c128_i32 : i32
    %11 = tpu.iota {dimensions = array<i32: 0>} : vector<128x1xi32>
    %12 = vector.broadcast %10 : i32 to vector<128x1xi32>
    %13 = arith.addi %12, %11 : vector<128x1xi32>
    %14 = tpu.iota {dimensions = array<i32: 1>} : vector<128x200xi32>
    %15 = vector.broadcast %13 : vector<128x1xi32> to vector<128x200xi32>
    %16 = arith.cmpi eq, %14, %15 : vector<128x200xi32>
    %cst_2 = arith.constant 0.000000e+00 : f32
    %17 = vector.broadcast %cst_2 : f32 to vector<128x200xf32>
    %18 = arith.select %16, %0, %17 : vector<128x200xi1>, vector<128x200xf32>
    %cst_3 = arith.constant dense<0.000000e+00> : vector<128xf32>
    %19 = vector.multi_reduction <add>, %18, %cst_3 [1] : vector<128x200xf32> to vector<128xf32>
    %20 = vector.shape_cast %19 : vector<128xf32> to vector<128x1xf32>
    %21 = arith.subf %9, %20 : vector<128x1xf32>
    %c200_i32 = arith.constant 200 : i32
    %22 = vector.broadcast %c200_i32 : i32 to vector<128x1xi32>
    %23 = arith.cmpi slt, %13, %22 : vector<128x1xi32>
    %cst_4 = arith.constant 0.000000e+00 : f32
    %24 = vector.broadcast %cst_4 : f32 to vector<128x1xf32>
    %25 = arith.select %23, %21, %24 : vector<128x1xi1>, vector<128x1xf32>
    %c0_5 = arith.constant 0 : index
    %c0_6 = arith.constant 0 : index
    %26 = vector.load %arg2[%c0_5, %c0_6] : memref<128x1xf32, #tpu.memory_space<vmem>>, vector<128x1xf32>
    tpu.vector_store %arg2[%c0_5, %c0_6], %25 {strides = array<i32>} : memref<128x1xf32, #tpu.memory_space<vmem>>, vector<128x1xf32>,
    return
  }
  func.func @transform_0(%arg0: i32) -> (i32, i32) {
    %c0_i32 = arith.constant 0 : i32
    %c0_i32_0 = arith.constant 0 : i32
    return %arg0, %c0_i32 : i32, i32
  }
  func.func @transform_1(%arg0: i32) -> (i32, i32) {
    %c0_i32 = arith.constant 0 : i32
    %c0_i32_0 = arith.constant 0 : i32
    return %arg0, %c0_i32 : i32, i32
  }
}

</mosaic_0001>

<bundles_post_ra>
// kernel: tpu_custom_call.1
= control target key start
LH: loop header
LB: loop body
LE: loop exit
PB: predicated region body
PF: predicated region fallthrough
CT: control target
= control target key end

     0   :  { %6 = vsyncpa [#allocation3], 0  ;;  %s2105_s0 = inlined_call_operand.hbm [shape: f32[200,200], index: 0, kind: input, shape index: {}]   ;;  %s2106_s1 = inlined_call_operand.vmem [shape: f32[200,1], index: 1, kind: output, shape index: {}]  }
   0x1   :  { %8 = vsyncpa [#allocation3 + $0x1], 0  ;;  %s1362_s6 = smov 0   ;;  %s1364_s7 = smov 0  }
   0x2   :  { %s1366_s8 = smov 0   ;;  %s1368_s9 = smov 0  }
   0x3 LB: > { %s1381_s10 = sadd.s32 4294967295, %s1315_s9   ;;  %s1384_s11 = sadd.s32 1, %s1315_s9   ;;  %s1315_s9 = sphi %s1368_s9, %s2118_s9   ;;  %s1311_s8 = sphi %s1366_s8, %s2117_s8   ;;  %s1307_s7 = sphi %s1364_s7, %s2116_s7   ;;  %s1303_s6 = sphi %s1362_s6, %s2115_s6  }
   0x4   : > { %s18_s12 = ssub.s32 %s1315_s9, %s1384_s11  ;;  %s21_s13 = sadd.s32 1, %s1311_s8 }
   0x5   : > { %p19_p0 = scmp.eq.s32.totalorder %s18_s12, 0  ;;  %p28_p1 = scmp.ne.s32.totalorder %s1311_s8, %s1307_s7 }
   0x6   : > { %p29_p2 = scmp.eq.s32.totalorder %s1315_s9, 0  ;;  %p34_p3 = scmp.ne.s32.totalorder %s1307_s7, %s1303_s6 }
   0x7   : > { %s1394_s14 = scalar_select %p19_p0, %s1311_s8, %s21_s13  }
   0x8   : > { %p30_p4 = por %p29_p2, %p28_p1  ;;  %p35_p5 = scmp.eq.s32.totalorder %s1381_s10, 0 }
   0x9   : > { %p58_p6 = scmp.eq.s32.totalorder %s1381_s10, 1  ;;  %p978_p9 = scmp.ge.s32.totalorder %s1315_s9, 2 }
   0xa   : > { %p1398_p7 = por %p35_p5, %p34_p3 }
   0xb   : > { %p1402_p8 = por %p58_p6, %p28_p1  ;;  %80 = sbr.rel (%p978_p9) target bundleno = 52 (0x34), region = 16 }
  0x10   : > { %83 = sbr.rel (!%p30_p4) target bundleno = 52 (0x34), region = 20  ;;  %s84_s17 = sand.u32 (%p30_p4), 1, %s1311_s8  }
  0x11   : > { %s980_s18 = sshll.u32 (%p30_p4), %s1315_s9, 4  ;;  %s979_s19 = sshll.u32 (%p30_p4), %s84_s17, 8 }
  0x12   : > { %s90_s20 = ssub.s32 (%p30_p4), 25, %s980_s18  ;;  %s1412_s24 = scalar_lea.sflag (%p30_p4), [#allocation3], %s84_s17 }
  0x13   : > { %p91_p10 = scmp.lt.s32.totalorder (%p30_p4), %s90_s20, 16  ;;  %s88_s25 = scalar_lea.vmem (%p30_p4), [#allocation2], %s979_s19 }
  0x15   : > { %s2120_s20 = smov (!%p91_p10, %s90_s20), 16 }
  0x16   : > { %s1009_s21 = sshll.u32 %s2120_s20, 4 }
  0x17   : > { %s95_s22 = ssub.s32 256, %s1009_s21 }
  0x18   : > { %s96_s23 = sshll.u32 %s95_s22, 4 }
  0x19   : > { %97 = vsyncadd %s1412_s24, %s96_s23  ;;  %p1415_p11 = scmp.ne.s32.totalorder %s1009_s21, 0  ;;  %s1011_s27 = sshll.u32 %s1315_s9, 8 }
  0x1a   : > { %s101_s30 = scalar_lea.hbm %s2105_s0, %s1011_s27  ;;  %s1423_s2 = sshll.u32 %s88_s25, 4  ;;  %s106_s2 = int_to_ptr.vmem [resolvable:$true] %s1423_s2 }
  0x1b   : > { %s103_s3 = sshll.u32 %s101_s30, 4  ;;  %s987_s4 = sshll.u32 %s2120_s20, 8  ;;  %s1426_s3 = int_to_ptr.hbm [resolvable:$true] %s103_s3 }
  0x1c   : > { %s1210_s5 = sshra.s32 %s1426_s3, 4  ;;  %s1212_s6 = sshrl.u32 %s987_s4, 4  ;;  %s1211_s5 = int_to_ptr.hbm [resolvable:$true] %s1210_s5 }
  0x1d   : > { %s1217_s12 = scalar_lea.hbm %s1211_s5, %s1212_s6  ;;  %s1221_s18 = scalar_lea.hbm %s2105_s0, 400 }
  0x1e   : > { %p1218_p12 = scmp.ne.s32.totalorder %s1211_s5, %s1217_s12  ;;  %p1222_p1 = scmp.lt.s32.totalorder %s1211_s5, %s2105_s0 }
  0x1f   : > { %p1223_p2 = scmp.lt.s32.totalorder %s1221_s18, %s1217_s12 }
  0x20   : > { %p1219_p13 = pnand %p1218_p12, %p1415_p11 }
  0x21   : > { %p1224_p3 = por %p1223_p2, %p1222_p1 }
  0x22   : > { %p1220_p0 = pneg %p1219_p13 }
  0x24   : > { %p1225_p4 = pnand %p1224_p3, %p1220_p0 }
  0x26   : > { %1228 = shalt.err (!%p1225_p4)
}
  0x27   : > { %s1229_s22 = sshra.s32 %s106_s2, 4  ;;  %s1349_s25 = smov [#allocation2]   ;;  %s1230_s22 = int_to_ptr.vmem [resolvable:$true] %s1229_s22 }
  0x28   : > { %s1236_s23 = scalar_lea.vmem %s1230_s22, %s1212_s6  ;;  %s1240_s27 = scalar_lea.vmem %s1349_s25, 512 }
  0x29   : > { %p1237_p5 = scmp.ne.s32.totalorder %s1230_s22, %s1236_s23  ;;  %p1242_p10 = scmp.lt.s32.totalorder %s1240_s27, %s1236_s23 }
  0x2b   : > { %p1238_p6 = pnand %p1237_p5, %p1415_p11 }
  0x2d   : > { %p1239_p9 = pneg %p1238_p6 }
  0x2f   : > { %p1244_p12 = pnand %p1242_p10, %p1239_p9 }
  0x31   : > { %1247 = shalt.err (!%p1244_p12)
}
  0x32   : > { %s1350_s28 = smov 256   ;;  %s1351_s29 = smov 16  }
  0x33   : > { %111 = dma.hbm_to_vmem [thread:$0]  (%p1415_p11), %s1426_s3, %s987_s4, %s106_s2, %s1412_s24, %s1350_s28, %s1350_s28, %s1351_s29  }
  0x34 PF: > { %p988_p13 = scmp.ge.s32.totalorder %s1315_s9, 1  ;;  %p113_p0 = scmp.lt.s32.totalorder %s1315_s9, 3 }
  0x36   : > { %p114_p1 = pnand %p988_p13, %p113_p0 }
  0x37   : > { %s1455_s30 = sand.u32 (!%p114_p1), 1, %s1307_s7  }
  0x38   : > { %117 = sbr.rel (%p114_p1) target bundleno = 425 (0x1a9), region = 24  ;;  %s989_s5 = sshll.u32 (!%p114_p1), %s1455_s30, 8 }
  0x39   : > { %s120_s6 = scalar_lea.sflag (!%p114_p1), [#allocation3], %s1455_s30  ;;  %s1459_s26 = scalar_lea.vmem (!%p114_p1), [#allocation2], %s989_s5 }
  0x3d   : > { %1298 = dma.done.wait (%p1398_p7), %s120_s6, 4096  }
  0x3e   : > { %1300 = vsyncadd (%p1398_p7), %s120_s6, 4294963200  ;;  %vm185_vm0 = vcmask 588800   ;;  %v1466_v0 = vld [vmem:[%s1459_s26 + $0x40] sm:$0xff]  ;;  %v1469_v1 = vld [vmem:[%s1459_s26 + $0x48] sm:$0xff]  ;;  %v459_v34 = vlaneseq  ;;  %s991_s9 = sshll.u32 %s1381_s10, 7  ;;  %s990_s15 = sshll.u32 %s1455_s30, 7 }
  0x3f   : > { %v1472_v2 = vld [vmem:[%s1459_s26 + $0x20] sm:$0xff]  ;;  %v202_v3 = vsel %vm185_vm0, %v1469_v1, -inf  ;;  %v1477_v4 = vld [vmem:[%s1459_s26 + $0x28] sm:$0xff]  ;;  %v1491_v10 = vld [vmem:[%s1459_s26 + $0x58] sm:$0xff]  ;;  %v1579_v50 = vstv %s991_s9  ;;  %s1929_s20 = scalar_lea.vmem [#allocation4], %s990_s15   ;;  %s993_s24 = sshll.u32 (%p1402_p8), %s1381_s10, 4 }
  0x40   : > { %v1480_v5 = vld [vmem:[%s1459_s26] sm:$0xff]  ;;  %v1483_v6 = vld [vmem:[%s1459_s26 + $0x8] sm:$0xff]  ;;  %v203_v7 = vmax.f32 %v1466_v0, %v202_v3  ;;  %v194_v8 = vsel %vm185_vm0, %v1477_v4, -inf  ;;  %v1496_v13 = vld [vmem:[%s1459_s26 + $0x38] sm:$0xff]  ;;  %v206_v16 = vsel %vm185_vm0, %v1491_v10, -inf  ;;  %v1555_v40 = vshrl.u32 %v459_v34, 7  ;;  %s2005_s4 = scalar_lea.vmem (%p1402_p8), %s2106_s1, %s991_s9  }
  0x41   : > { %v186_v9 = vsel %vm185_vm0, %v1483_v6, -inf  ;;  %v195_v11 = vmax.f32 %v1472_v2, %v194_v8  ;;  %v1499_v14 = vld [vmem:[%s1459_s26 + $0x18] sm:$0xff]  ;;  %v1502_v15 = vld [vmem:[%s1459_s26 + $0x50] sm:$0xff]  ;;  %v198_v18 = vsel %vm185_vm0, %v1496_v13, -inf  ;;  %v1520_v24 = vld [vmem:[%s1459_s26 + $0x88] sm:$0xff]  ;;  %v1573_v47 = vand.u32 127, %v459_v34 }
  0x42   : > { %v187_v12 = vmax.f32 %v1480_v5, %v186_v9  ;;  %204 = vmax.xlane.f32.xlu2 %v203_v7  ;;  %v1507_v17 = vld [vmem:[%s1459_s26 + $0x30] sm:$0xff]  ;;  %v190_v20 = vsel %vm185_vm0, %v1499_v14, -inf  ;;  %v207_v21 = vmax.f32 %v1502_v15, %v206_v16  ;;  %v1523_v25 = vld [vmem:[%s1459_s26 + $0x68] sm:$0xff]  ;;  %v1526_v26 = vld [vmem:[%s1459_s26 + $0x78] sm:$0xff]  ;;  %v218_v28 = vsel %vm185_vm0, %v1520_v24, -inf  ;;  %s697_s12 = ssub.s32 (%p1402_p8), 25, %s993_s24 }
  0x43   : > { %196 = vmax.xlane.f32.xlu1 %v195_v11  ;;  %v1512_v19 = vld [vmem:[%s1459_s26 + $0x10] sm:$0xff]  ;;  %v199_v22 = vmax.f32 %v1507_v17, %v198_v18  ;;  %v1529_v27 = vld [vmem:[%s1459_s26 + $0x80] sm:$0xff]  ;;  %v210_v30 = vsel %vm185_vm0, %v1523_v25, -inf  ;;  %v214_v32 = vsel %vm185_vm0, %v1526_v26, -inf  ;;  %v1547_v37 = vld [vmem:[%s1459_s26 + $0xb8] sm:$0xff]  ;;  %v462_v49 = vadd.s32 16, %v1555_v40 }
  0x44   : > { %188 = vmax.xlane.f32.xlu0 %v187_v12  ;;  %v191_v23 = vmax.f32 %v1512_v19, %v190_v20  ;;  %v1534_v29 = vld [vmem:[%s1459_s26 + $0x60] sm:$0xff]  ;;  %v1539_v31 = vld [vmem:[%s1459_s26 + $0x70] sm:$0xff]  ;;  %v219_v33 = vmax.f32 %v1529_v27, %v218_v28  ;;  %v1550_v38 = vld [vmem:[%s1459_s26 + $0x98] sm:$0xff]  ;;  %v230_v42 = vsel %vm185_vm0, %v1547_v37, -inf  ;;  %v1593_v56 = vadd.s32 128, %v1573_v47  ;;  %p698_p7 = scmp.lt.s32.totalorder (%p1402_p8), %s697_s12, 16 }
  0x45   : > { %v211_v35 = vmax.f32 %v1534_v29, %v210_v30  ;;  %v215_v36 = vmax.f32 %v1539_v31, %v214_v32  ;;  %v1553_v39 = vld [vmem:[%s1459_s26 + $0xa8] sm:$0xff]  ;;  %v1558_v41 = vld [vmem:[%s1459_s26 + $0xb0] sm:$0xff]  ;;  %v222_v44 = vsel %vm185_vm0, %v1550_v38, -inf  ;;  %v1569_v45 = vld [vmem:[%s1459_s26 + $0xa0] sm:$0xff]  ;;  %v1597_v57 = vadd.s32 %v1579_v50, %v1555_v40 }
  0x46   : > { %v1564_v43 = vld [vmem:[%s1459_s26 + $0x90] sm:$0xff]  ;;  %v226_v46 = vsel %vm185_vm0, %v1553_v39, -inf  ;;  %v231_v48 = vmax.f32 %v1558_v41, %v230_v42  ;;  %v1584_v53 = vld [vmem:[%s1459_s26 + $0xe8] sm:$0xff]  ;;  %v1590_v55 = vld [vmem:[%s1459_s26 + $0xd8] sm:$0xff]  ;;  %v1600_v58 = vadd.s32 %v1579_v50, %v462_v49  ;;  %v463_v7 = vadd.s32 24, %v1555_v40 }
  0x47   : > { %v223_v51 = vmax.f32 %v1564_v43, %v222_v44  ;;  %v227_v52 = vmax.f32 %v1569_v45, %v226_v46  ;;  %v1587_v54 = vld [vmem:[%s1459_s26 + $0xc8] sm:$0xff]  ;;  %v1603_v59 = vld [vmem:[%s1459_s26 + $0xe0] sm:$0xff]  ;;  %v242_v60 = vsel %vm185_vm0, %v1584_v53, -inf  ;;  %v1613_v63 = vld [vmem:[%s1459_s26 + $0xd0] sm:$0xff]  ;;  %v238_v3 = vsel %vm185_vm0, %v1590_v55, -inf }
  0x48   : > { %v1608_v61 = vld [vmem:[%s1459_s26 + $0xc0] sm:$0xff]  ;;  %v234_v62 = vsel %vm185_vm0, %v1587_v54, -inf  ;;  %vm497_vm1 = vcmp.eq.s32.totalorder %v1593_v56, %v1597_v57  ;;  %v243_v8 = vmax.f32 %v1603_v59, %v242_v60  ;;  %vm501_vm2 = vcmp.eq.s32.totalorder %v1593_v56, %v1600_v58  ;;  %v1631_v20 = vld [vmem:[%s1459_s26 + $0xf8] sm:$0xff] }
  0x49   : > { %v461_v9 = vadd.s32 8, %v1555_v40  ;;  %v465_v11 = vadd.s32 40, %v1555_v40  ;;  %v235_v12 = vmax.f32 %v1608_v61, %v234_v62  ;;  %v239_v16 = vmax.f32 %v1613_v63, %v238_v3 }
  0x4a   : > { %208 = vmax.xlane.f32.xlu2 %v207_v21  ;;  %vm496_vm3 = vcmp.eq.s32.totalorder %v1573_v47, %v1597_v57  ;;  %v529_v18 = vsel %vm497_vm1, %v1483_v6, 0.0  ;;  %vm500_vm4 = vcmp.eq.s32.totalorder %v1573_v47, %v1600_v58  ;;  %v533_v21 = vsel %vm501_vm2, %v1477_v4, 0.0 }
  0x4b   : > { %200 = vmax.xlane.f32.xlu1 %v199_v22  ;;  %v1637_v22 = vadd.s32 %v1579_v50, %v463_v7  ;;  %v1643_v28 = vadd.s32 %v1579_v50, %v465_v11  ;;  %v528_v30 = vsel %vm496_vm3, %v1480_v5, 0.0  ;;  %v560_v32 = vsel %vm185_vm0, %v529_v18, 0.0 }
  0x4c   : > { %192 = vmax.xlane.f32.xlu0 %v191_v23  ;;  %v1640_v23 = vadd.s32 %v1579_v50, %v461_v9  ;;  %v246_v34 = vsel %vm185_vm0, %v1631_v20, -inf  ;;  %v561_v42 = vadd.f32 %v560_v32, %v528_v30  ;;  %v464_v44 = vadd.s32 32, %v1555_v40 }
  0x4d   : > { %vm503_vm5 = vcmp.eq.s32.totalorder %v1593_v56, %v1637_v22  ;;  %vm507_vm7 = vcmp.eq.s32.totalorder %v1593_v56, %v1643_v28  ;;  %vm502_vm8 = vcmp.eq.s32.totalorder %v1573_v47, %v1637_v22  ;;  %vm506_vm10 = vcmp.eq.s32.totalorder %v1573_v47, %v1643_v28 }
  0x4e   : > { %vm499_vm6 = vcmp.eq.s32.totalorder %v1593_v56, %v1640_v23  ;;  %v535_v49 = vsel %vm503_vm5, %v1496_v13, 0.0  ;;  %vm498_vm9 = vcmp.eq.s32.totalorder %v1573_v47, %v1640_v23  ;;  %v1672_v60 = vadd.s32 %v1579_v50, %v464_v44 }
  0x4f   : > { %v534_v62 = vsel %vm502_vm8, %v1507_v17, 0.0  ;;  %v572_v3 = vsel %vm185_vm0, %v535_v49, 0.0  ;;  %v530_v7 = vsel %vm498_vm9, %v1512_v19, 0.0  ;;  %v538_v9 = vsel %vm506_vm10, %v1502_v15, 0.0 }
  0x50   : > { %vm505_vm11 = vcmp.eq.s32.totalorder %v1593_v56, %v1672_v60  ;;  %vm504_vm12 = vcmp.eq.s32.totalorder %v1573_v47, %v1672_v60 }
  0x51   : > { %v536_v30 = vsel %vm504_vm12, %v1466_v0, 0.0 }
  0x52   : > { %220 = vmax.xlane.f32.xlu2 %v219_v33  ;;  %v1648_v33 = vld [vmem:[%s1459_s26 + $0xf0] sm:$0xff] }
  0x53   : > { %216 = vmax.xlane.f32.xlu1 %v215_v36  ;;  %v568_v36 = vsel %vm185_vm0, %v533_v21, 0.0  ;;  %v247_v46 = vmax.f32 %v1648_v33, %v246_v34  ;;  %v537_v21 = vsel %vm505_vm11, %v1469_v1, 0.0 }
  0x54   : > { %212 = vmax.xlane.f32.xlu0 %v211_v35  ;;  %v532_v35 = vsel %vm500_vm4, %v1472_v2, 0.0  ;;  %v576_v32 = vsel %vm185_vm0, %v537_v21, 0.0 }
  0x55   : > { %v577_v34 = vadd.f32 %v576_v32, %v536_v30 }
  0x5a   : > { %232 = vmax.xlane.f32.xlu2 %v231_v48  ;;  %v569_v48 = vadd.f32 %v568_v36, %v532_v35  ;;  %v468_v35 = vadd.s32 64, %v1555_v40  ;;  %v466_v36 = vadd.s32 48, %v1555_v40 }
  0x5b   : > { %228 = vmax.xlane.f32.xlu1 %v227_v52  ;;  %v539_v52 = vsel %vm507_vm7, %v1491_v10, 0.0 }
  0x5c   : > { %224 = vmax.xlane.f32.xlu0 %v223_v51  ;;  %v531_v51 = vsel %vm499_vm6, %v1499_v14, 0.0  ;;  %v580_v11 = vsel %vm185_vm0, %v539_v52, 0.0  ;;  %v1691_v44 = vadd.s32 %v1579_v50, %v468_v35 }
  0x5d   : > { %v581_v18 = vadd.f32 %v580_v11, %v538_v9 }
  0x5e   : > { %vm513_vm13 = vcmp.eq.s32.totalorder %v1593_v56, %v1691_v44  ;;  %vm512_vm1 = vcmp.eq.s32.totalorder %v1573_v47, %v1691_v44 }
  0x5f   : > { %v545_v49 = vsel %vm513_vm13, %v1520_v24, 0.0  ;;  %v544_v52 = vsel %vm512_vm1, %v1529_v27, 0.0 }
  0x62   : > { %244 = vmax.xlane.f32.xlu2 %v243_v8  ;;  %v564_v8 = vsel %vm185_vm0, %v531_v51, 0.0 }
  0x63   : > { %240 = vmax.xlane.f32.xlu1 %v239_v16  ;;  %v565_v16 = vadd.f32 %v564_v8, %v530_v7 }
  0x64   : > { %236 = vmax.xlane.f32.xlu0 %v235_v12  ;;  %v573_v12 = vadd.f32 %v572_v3, %v534_v62  ;;  %v592_v62 = vsel %vm185_vm0, %v545_v49, 0.0 }
  0x65   : > { %v593_v8 = vadd.f32 %v592_v62, %v544_v52 }
  0x6a   : > { %562 = vadd.xlane.f32.xlu2 %v561_v42  ;;  %v467_v42 = vadd.s32 56, %v1555_v40 }
  0x6b   : > { %570 = vadd.xlane.f32.xlu1 %v569_v48 }
  0x6c   : > { %248 = vmax.xlane.f32.xlu0 %v247_v46  ;;  %v1694_v46 = vadd.s32 %v1579_v50, %v466_v36  ;;  %v1697_v48 = vadd.s32 %v1579_v50, %v467_v42 }
  0x6e   : > { %vm509_vm14 = vcmp.eq.s32.totalorder %v1593_v56, %v1694_v46  ;;  %vm511_vm15 = vcmp.eq.s32.totalorder %v1593_v56, %v1697_v48  ;;  %vm508_vm2 = vcmp.eq.s32.totalorder %v1573_v47, %v1694_v46  ;;  %vm510_vm3 = vcmp.eq.s32.totalorder %v1573_v47, %v1697_v48 }
  0x6f   : > { %v541_v51 = vsel %vm509_vm14, %v1523_v25, 0.0  ;;  %v540_v3 = vsel %vm508_vm2, %v1534_v29, 0.0  ;;  %v543_v11 = vsel %vm511_vm15, %v1526_v26, 0.0 }
  0x70   : > { %v584_v7 = vsel %vm185_vm0, %v541_v51, 0.0 }
  0x71   : > { %v585_v9 = vadd.f32 %v584_v7, %v540_v3 }
  0x72   : > { %574 = vadd.xlane.f32.xlu2 %v573_v12  ;;  %v542_v12 = vsel %vm510_vm3, %v1539_v31, 0.0  ;;  %vm672_vm3 = vcmask 7168  }
  0x73   : > { %582 = vadd.xlane.f32.xlu1 %v581_v18  ;;  %v469_v18 = vadd.s32 72, %v1555_v40 }
  0x74   : > { %566 = vadd.xlane.f32.xlu0 %v565_v16  ;;  %v588_v16 = vsel %vm185_vm0, %v543_v11, 0.0 }
  0x75   : > { %v589_v21 = vadd.f32 %v588_v16, %v542_v12  ;;  %v1722_v30 = vadd.s32 %v1579_v50, %v469_v18 }
  0x77   : > { %vm515_vm4 = vcmp.eq.s32.totalorder %v1593_v56, %v1722_v30  ;;  %vm514_vm5 = vcmp.eq.s32.totalorder %v1573_v47, %v1722_v30 }
  0x78   : > { %v547_v32 = vsel %vm515_vm4, %v1550_v38, 0.0  ;;  %vm640_vm4 = vcmp.lt.s32.totalorder %v1597_v57, 200 }
  0x79   : > { %v596_v35 = vsel %vm185_vm0, %v547_v32, 0.0 }
  0x7a   : > { %586 = vadd.xlane.f32.xlu2 %v585_v9 }
  0x7b   : > { %594 = vadd.xlane.f32.xlu1 %v593_v8 }
  0x7c   : > { %578 = vadd.xlane.f32.xlu0 %v577_v34  ;;  %v546_v34 = vsel %vm514_vm5, %v1564_v43, 0.0  ;;  %vm645_vm5 = vcmp.lt.s32.totalorder %v1643_v28, 200 }
  0x7d   : > { %v597_v36 = vadd.f32 %v596_v35, %v546_v34 }
  0x82   : > { %598 = vadd.xlane.f32.xlu2 %v597_v36 }
  0x84   : > { %590 = vadd.xlane.f32.xlu0 %v589_v21 }
  0xb5   : > { %v1731_v42 = vpop.xlane.xlu2 %204 }
  0xb6   : > { %v1733_v49 = vpop.xlane.xlu1 %196 }
  0xb7   : > { %v1735_v51 = vpop.xlane.xlu0 %188  ;;  %v254_v52 = vsub.f32 %v1472_v2, %v1733_v49  ;;  %v255_v62 = vsub.f32 %v1477_v4, %v1733_v49 }
  0xb8   : > { %v250_v3 = vsub.f32 %v1480_v5, %v1735_v51  ;;  %v251_v7 = vsub.f32 %v1483_v6, %v1735_v51 }
  0xb9   : > { %v290_v8 = vmul.f32 1.442695, %v254_v52  ;;  %v292_v9 = vmul.f32 1.442695, %v255_v62 }
  0xba   : > { %v282_v11 = vmul.f32 1.442695, %v250_v3  ;;  %v284_v12 = vmul.f32 1.442695, %v251_v7 }
  0xbb   : > { %1114 = vpow2.f32 %v290_v8 }
  0xbc   : > { %1116 = vpow2.f32 %v292_v9  ;;  %v258_v9 = vsub.f32 %v1466_v0, %v1731_v42 }
  0xbd   : > { %v1745_v16 = vpop.xlane.xlu2 %208  ;;  %1118 = vpow2.f32 %v282_v11 }
  0xbe   : > { %v260_v2 = vsub.f32 %v1502_v15, %v1745_v16  ;;  %v261_v4 = vsub.f32 %v1491_v10, %v1745_v16  ;;  %v1751_v18 = vpop.xlane.xlu1 %200  ;;  %1120 = vpow2.f32 %v284_v12  ;;  %v259_v10 = vsub.f32 %v1469_v1, %v1731_v42 }
  0xbf   : > { %v1753_v5 = vpop.xlane.xlu0 %192  ;;  %v256_v6 = vsub.f32 %v1507_v17, %v1751_v18  ;;  %v257_v21 = vsub.f32 %v1496_v13, %v1751_v18 }
  0xc0   : > { %v252_v32 = vsub.f32 %v1512_v19, %v1753_v5  ;;  %v302_v34 = vmul.f32 1.442695, %v260_v2  ;;  %v304_v35 = vmul.f32 1.442695, %v261_v4  ;;  %v253_v15 = vsub.f32 %v1499_v14, %v1753_v5 }
  0xc1   : > { %v294_v36 = vmul.f32 1.442695, %v256_v6  ;;  %v296_v52 = vmul.f32 1.442695, %v257_v21  ;;  %v1115_v62 = vpop.eup %1114  ;;  %v300_v14 = vmul.f32 1.442695, %v259_v10 }
  0xc2   : > { %1122 = vpow2.f32 %v302_v34  ;;  %v286_v3 = vmul.f32 1.442695, %v252_v32  ;;  %v1117_v17 = vpop.eup %1116  ;;  %v288_v7 = vmul.f32 1.442695, %v253_v15 }
  0xc3   : > { %1124 = vpow2.f32 %v304_v35  ;;  %v1119_v13 = vpop.eup %1118  ;;  %v354_v19 = vsel %vm185_vm0, %v1117_v17, 0.0  ;;  %v298_v17 = vmul.f32 1.442695, %v258_v9 }
  0xc4   : > { %1126 = vpow2.f32 %v294_v36  ;;  %v1121_v8 = vpop.eup %1120  ;;  %v355_v11 = vadd.f32 %v1115_v62, %v354_v19 }
  0xc5   : > { %1128 = vpow2.f32 %v296_v52  ;;  %v1768_v1 = vpop.xlane.xlu2 %220  ;;  %v346_v12 = vsel %vm185_vm0, %v1121_v8, 0.0 }
  0xc6   : > { %1130 = vpow2.f32 %v286_v3  ;;  %v266_v2 = vsub.f32 %v1529_v27, %v1768_v1  ;;  %v267_v4 = vsub.f32 %v1520_v24, %v1768_v1  ;;  %v1777_v21 = vpop.xlane.xlu1 %216  ;;  %356 = vadd.xlane.f32.xlu0 %v355_v11  ;;  %v347_v0 = vadd.f32 %v1119_v13, %v346_v12 }
  0xc7   : > { %v1775_v6 = vpop.xlane.xlu0 %212  ;;  %1132 = vpow2.f32 %v288_v7  ;;  %v264_v27 = vsub.f32 %v1539_v31, %v1777_v21  ;;  %v265_v62 = vsub.f32 %v1526_v26, %v1777_v21 }
  0xc8   : > { %v262_v32 = vsub.f32 %v1534_v29, %v1775_v6  ;;  %v263_v34 = vsub.f32 %v1523_v25, %v1775_v6  ;;  %v1123_v35 = vpop.eup %1122  ;;  %v314_v15 = vmul.f32 1.442695, %v266_v2  ;;  %v316_v10 = vmul.f32 1.442695, %v267_v4  ;;  %348 = vadd.xlane.f32.xlu1 %v347_v0 }
  0xc9   : > { %v1125_v24 = vpop.eup %1124  ;;  %1134 = vpow2.f32 %v300_v14  ;;  %v310_v19 = vmul.f32 1.442695, %v264_v27  ;;  %v312_v14 = vmul.f32 1.442695, %v265_v62 }
  0xca   : > { %v306_v36 = vmul.f32 1.442695, %v262_v32  ;;  %v308_v52 = vmul.f32 1.442695, %v263_v34  ;;  %v1127_v3 = vpop.eup %1126  ;;  %1136 = vpow2.f32 %v314_v15  ;;  %v366_v29 = vsel %vm185_vm0, %v1125_v24, 0.0 }
  0xcb   : > { %v1129_v25 = vpop.eup %1128  ;;  %1138 = vpow2.f32 %v316_v10  ;;  %v367_v7 = vadd.f32 %v1123_v35, %v366_v29 }
  0xcc   : > { %v1131_v13 = vpop.eup %1130  ;;  %1140 = vpow2.f32 %v306_v36  ;;  %v358_v31 = vsel %vm185_vm0, %v1129_v25, 0.0 }
  0xcd   : > { %v1133_v8 = vpop.eup %1132  ;;  %1142 = vpow2.f32 %v308_v52  ;;  %v359_v11 = vadd.f32 %v1127_v3, %v358_v31  ;;  %v1789_v12 = vpop.xlane.xlu2 %232 }
  0xce   : > { %1144 = vpow2.f32 %v298_v17  ;;  %v350_v26 = vsel %vm185_vm0, %v1133_v8, 0.0  ;;  %v272_v9 = vsub.f32 %v1558_v41, %v1789_v12  ;;  %v273_v2 = vsub.f32 %v1547_v37, %v1789_v12  ;;  %v1798_v0 = vpop.xlane.xlu1 %228  ;;  %368 = vadd.xlane.f32.xlu0 %v367_v7 }
  0xcf   : > { %v1796_v4 = vpop.xlane.xlu0 %224  ;;  %v1135_v32 = vpop.eup %1134  ;;  %v351_v34 = vadd.f32 %v1131_v13, %v350_v26  ;;  %1146 = vpow2.f32 %v310_v19  ;;  %v270_v36 = vsub.f32 %v1569_v45, %v1798_v0  ;;  %v271_v17 = vsub.f32 %v1553_v39, %v1798_v0 }
  0xd0   : > { %v268_v35 = vsub.f32 %v1564_v43, %v1796_v4  ;;  %v269_v15 = vsub.f32 %v1550_v38, %v1796_v4  ;;  %v1137_v10 = vpop.eup %1136  ;;  %v326_v27 = vmul.f32 1.442695, %v272_v9  ;;  %v328_v24 = vmul.f32 1.442695, %v273_v2  ;;  %360 = vadd.xlane.f32.xlu1 %v359_v11 }
  0xd1   : > { %v1139_v52 = vpop.eup %1138  ;;  %1148 = vpow2.f32 %v312_v14  ;;  %352 = vadd.xlane.f32.xlu2 %v351_v34  ;;  %v322_v13 = vmul.f32 1.442695, %v270_v36  ;;  %v362_v19 = vsel %vm185_vm0, %v1135_v32, 0.0  ;;  %v324_v8 = vmul.f32 1.442695, %v271_v17 }
  0xd2   : > { %v318_v62 = vmul.f32 1.442695, %v268_v35  ;;  %v320_v3 = vmul.f32 1.442695, %v269_v15  ;;  %v1141_v43 = vpop.eup %1140  ;;  %1150 = vpow2.f32 %v326_v27  ;;  %v378_v38 = vsel %vm185_vm0, %v1139_v52, 0.0 }
  0xd3   : > { %v1143_v29 = vpop.eup %1142  ;;  %1152 = vpow2.f32 %v328_v24  ;;  %v379_v25 = vadd.f32 %v1137_v10, %v378_v38 }
  0xd4   : > { %v1145_v7 = vpop.eup %1144  ;;  %1154 = vpow2.f32 %v318_v62  ;;  %v370_v31 = vsel %vm185_vm0, %v1143_v29, 0.0  ;;  %v470_v62 = vadd.s32 80, %v1555_v40 }
  0xd5   : > { %1156 = vpow2.f32 %v320_v3  ;;  %v371_v14 = vadd.f32 %v1141_v43, %v370_v31  ;;  %v1811_v11 = vpop.xlane.xlu2 %244  ;;  %v1147_v26 = vpop.eup %1146  ;;  %v363_v32 = vadd.f32 %v1145_v7, %v362_v19 }
  0xd6   : > { %v278_v9 = vsub.f32 %v1603_v59, %v1811_v11  ;;  %v279_v2 = vsub.f32 %v1584_v53, %v1811_v11  ;;  %v1819_v35 = vpop.xlane.xlu1 %240  ;;  %380 = vadd.xlane.f32.xlu0 %v379_v25  ;;  %1158 = vpow2.f32 %v322_v13 }
  0xd7   : > { %v1817_v34 = vpop.xlane.xlu0 %236  ;;  %v1149_v15 = vpop.eup %1148  ;;  %1160 = vpow2.f32 %v324_v8  ;;  %v277_v38 = vsub.f32 %v1590_v55, %v1819_v35  ;;  %v276_v25 = vsub.f32 %v1613_v63, %v1819_v35 }
  0xd8   : > { %v274_v10 = vsub.f32 %v1608_v61, %v1817_v34  ;;  %v275_v27 = vsub.f32 %v1587_v54, %v1817_v34  ;;  %v1151_v24 = vpop.eup %1150  ;;  %v338_v36 = vmul.f32 1.442695, %v278_v9  ;;  %v340_v52 = vmul.f32 1.442695, %v279_v2  ;;  %372 = vadd.xlane.f32.xlu1 %v371_v14 }
  0xd9   : > { %v1153_v3 = vpop.eup %1152  ;;  %364 = vadd.xlane.f32.xlu2 %v363_v32  ;;  %v374_v13 = vsel %vm185_vm0, %v1149_v15, 0.0  ;;  %v1834_v14 = vadd.s32 %v1579_v50, %v470_v62  ;;  %v336_v9 = vmul.f32 1.442695, %v277_v38 }
  0xda   : > { %v330_v17 = vmul.f32 1.442695, %v274_v10  ;;  %v332_v43 = vmul.f32 1.442695, %v275_v27  ;;  %v1155_v29 = vpop.eup %1154  ;;  %1162 = vpow2.f32 %v338_v36  ;;  %v390_v7 = vsel %vm185_vm0, %v1153_v3, 0.0 }
  0xdb   : > { %v1157_v19 = vpop.eup %1156  ;;  %1164 = vpow2.f32 %v340_v52  ;;  %v391_v31 = vadd.f32 %v1151_v24, %v390_v7  ;;  %v375_v2 = vadd.f32 %v1147_v26, %v374_v13  ;;  %v334_v27 = vmul.f32 1.442695, %v276_v25 }
  0xdc   : > { %1166 = vpow2.f32 %v330_v17  ;;  %v382_v8 = vsel %vm185_vm0, %v1157_v19, 0.0  ;;  %v1159_v10 = vpop.eup %1158  ;;  %vm517_vm6 = vcmp.eq.s32.totalorder %v1593_v56, %v1834_v14  ;;  %v473_v25 = vadd.s32 104, %v1555_v40 }
  0xdd   : > { %1168 = vpow2.f32 %v332_v43  ;;  %v383_v32 = vadd.f32 %v1155_v29, %v382_v8  ;;  %v1161_v3 = vpop.eup %1160  ;;  %v471_v8 = vadd.s32 88, %v1555_v40  ;;  %vm516_vm7 = vcmp.eq.s32.totalorder %v1573_v47, %v1834_v14 }
  0xde   : > { %392 = vadd.xlane.f32.xlu0 %v391_v31  ;;  %1170 = vpow2.f32 %v336_v9  ;;  %v386_v29 = vsel %vm185_vm0, %v1161_v3, 0.0  ;;  %v472_v31 = vadd.s32 96, %v1555_v40 }
  0xdf   : > { %v1836_v36 = vpop.xlane.xlu0 %248  ;;  %1172 = vpow2.f32 %v334_v27  ;;  %v387_v9 = vadd.f32 %v1159_v10, %v386_v29  ;;  %v1857_v27 = vadd.s32 %v1579_v50, %v473_v25  ;;  %v474_v29 = vadd.s32 112, %v1555_v40 }
  0xe0   : > { %v280_v15 = vsub.f32 %v1648_v33, %v1836_v36  ;;  %v281_v24 = vsub.f32 %v1631_v20, %v1836_v36  ;;  %v1163_v52 = vpop.eup %1162  ;;  %384 = vadd.xlane.f32.xlu1 %v383_v32  ;;  %v549_v32 = vsel %vm517_vm6, %v1553_v39, 0.0  ;;  %v1862_v10 = vadd.s32 %v1579_v50, %v472_v31 }
  0xe1   : > { %v1165_v17 = vpop.eup %1164  ;;  %376 = vadd.xlane.f32.xlu2 %v375_v2  ;;  %vm523_vm8 = vcmp.eq.s32.totalorder %v1593_v56, %v1857_v27  ;;  %vm522_vm11 = vcmp.eq.s32.totalorder %v1573_v47, %v1857_v27  ;;  %vm643_vm6 = vcmp.lt.s32.totalorder %v1637_v22, 200 }
  0xe2   : > { %v342_v62 = vmul.f32 1.442695, %v280_v15  ;;  %v344_v26 = vmul.f32 1.442695, %v281_v24  ;;  %v1167_v43 = vpop.eup %1166  ;;  %v402_v38 = vsel %vm185_vm0, %v1165_v17, 0.0  ;;  %v548_v24 = vsel %vm516_vm7, %v1569_v45, 0.0 }
  0xe3   : > { %v1169_v7 = vpop.eup %1168  ;;  %v403_v13 = vadd.f32 %v1163_v52, %v402_v38  ;;  %v600_v52 = vsel %vm185_vm0, %v549_v32, 0.0  ;;  %v1865_v17 = vadd.s32 %v1579_v50, %v471_v8  ;;  %vm521_vm9 = vcmp.eq.s32.totalorder %v1593_v56, %v1862_v10 }
  0xe4   : > { %1174 = vpow2.f32 %v342_v62  ;;  %v394_v19 = vsel %vm185_vm0, %v1169_v7, 0.0  ;;  %v1171_v3 = vpop.eup %1170  ;;  %v601_v45 = vadd.f32 %v600_v52, %v548_v24  ;;  %v475_v38 = vadd.s32 120, %v1555_v40 }
  0xe5   : > { %1176 = vpow2.f32 %v344_v26  ;;  %v395_v2 = vadd.f32 %v1167_v43, %v394_v19  ;;  %v1173_v15 = vpop.eup %1172  ;;  %v398_v26 = vsel %vm185_vm0, %v1171_v3, 0.0  ;;  %vm519_vm10 = vcmp.eq.s32.totalorder %v1593_v56, %v1865_v17 }
  0xe6   : > { %404 = vadd.xlane.f32.xlu0 %v403_v13  ;;  %v399_v25 = vadd.f32 %v1173_v15, %v398_v26  ;;  %v555_v13 = vsel %vm523_vm8, %v1590_v55, 0.0  ;;  %vm520_vm12 = vcmp.eq.s32.totalorder %v1573_v47, %v1862_v10  ;;  %v553_v19 = vsel %vm521_vm9, %v1587_v54, 0.0 }
  0xe7   : > { %vm518_vm13 = vcmp.eq.s32.totalorder %v1573_v47, %v1865_v17  ;;  %v551_v31 = vsel %vm519_vm10, %v1547_v37, 0.0  ;;  %v554_v40 = vsel %vm522_vm11, %v1613_v63, 0.0  ;;  %v612_v8 = vsel %vm185_vm0, %v555_v13, 0.0  ;;  %v1912_v26 = vpop.xlane.xlu0 %566 }
  0xe8   : > { %396 = vadd.xlane.f32.xlu1 %v395_v2  ;;  %v1892_v55 = vadd.s32 %v1579_v50, %v474_v29  ;;  %v552_v2 = vsel %vm520_vm12, %v1608_v61, 0.0  ;;  %v608_v54 = vsel %vm185_vm0, %v553_v19, 0.0  ;;  %v550_v32 = vsel %vm518_vm13, %v1558_v41, 0.0 }
  0xe9   : > { %388 = vadd.xlane.f32.xlu2 %v387_v9  ;;  %v1889_v9 = vadd.s32 %v1579_v50, %v475_v38  ;;  %v604_v37 = vsel %vm185_vm0, %v551_v31, 0.0  ;;  %v613_v3 = vadd.f32 %v612_v8, %v554_v40  ;;  %v609_v63 = vadd.f32 %v608_v54, %v552_v2 }
  0xea   : > { %v1175_v62 = vpop.eup %1174  ;;  %vm525_vm15 = vcmp.eq.s32.totalorder %v1593_v56, %v1892_v55  ;;  %v605_v50 = vadd.f32 %v604_v37, %v550_v32  ;;  %vm524_vm2 = vcmp.eq.s32.totalorder %v1573_v47, %v1892_v55  ;;  %vm641_vm7 = vcmp.lt.s32.totalorder %v1640_v23, 200 }
  0xeb   : > { %v1177_v39 = vpop.eup %1176  ;;  %vm527_vm14 = vcmp.eq.s32.totalorder %v1593_v56, %v1889_v9  ;;  %vm526_vm1 = vcmp.eq.s32.totalorder %v1573_v47, %v1889_v9  ;;  %v557_v41 = vsel %vm525_vm15, %v1584_v53, 0.0  ;;  %v556_v56 = vsel %vm524_vm2, %v1603_v59, 0.0  ;;  %v571_v47 = vpop.xlane.xlu1 %570 }
  0xec   : > { %v406_v43 = vsel %vm185_vm0, %v1177_v39, 0.0  ;;  %v559_v61 = vsel %vm527_vm14, %v1631_v20, 0.0  ;;  %v558_v15 = vsel %vm526_vm1, %v1648_v33, 0.0  ;;  %v616_v52 = vsel %vm185_vm0, %v557_v41, 0.0  ;;  %v563_v20 = vpop.xlane.xlu2 %562 }
  0xed   : > { %v407_v7 = vadd.f32 %v1175_v62, %v406_v43  ;;  %v620_v24 = vsel %vm185_vm0, %v559_v61, 0.0  ;;  %v617_v39 = vadd.f32 %v616_v52, %v556_v56  ;;  %vm642_vm0 = vcmp.lt.s32.totalorder %v1600_v58, 200 }
  0xee   : > { %602 = vadd.xlane.f32.xlu0 %v601_v45  ;;  %v621_v62 = vadd.f32 %v620_v24, %v558_v15  ;;  %vm648_vm8 = vcmp.lt.s32.totalorder %v1691_v44, 200  ;;  %vm644_vm9 = vcmp.lt.s32.totalorder %v1672_v60, 200  ;;  %vm646_vm10 = vcmp.lt.s32.totalorder %v1694_v46, 200 }
  0xef   : > { %v1914_v43 = vpop.xlane.xlu0 %578  ;;  %vm647_vm11 = vcmp.lt.s32.totalorder %v1697_v48, 200  ;;  %vm649_vm12 = vcmp.lt.s32.totalorder %v1722_v30, 200  ;;  %vm650_vm13 = vcmp.lt.s32.totalorder %v1834_v14, 200  ;;  %vm652_vm14 = vcmp.lt.s32.totalorder %v1862_v10, 200 }
  0xf0   : > { %408 = vadd.xlane.f32.xlu1 %v407_v7  ;;  %vm651_vm15 = vcmp.lt.s32.totalorder %v1865_v17, 200  ;;  %vm653_vm1 = vcmp.lt.s32.totalorder %v1857_v27, 200  ;;  %vm655_vm2 = vcmp.lt.s32.totalorder %v1889_v9, 200 }
  0xf1   : > { %400 = vadd.xlane.f32.xlu2 %v399_v25 }
  0xf3   : > { %v583_v45 = vpop.xlane.xlu1 %582 }
  0xf4   : > { %v575_v53 = vpop.xlane.xlu2 %574 }
  0xf6   : > { %614 = vadd.xlane.f32.xlu0 %v613_v3 }
  0xf7   : > { %v1918_v38 = vpop.xlane.xlu0 %590 }
  0xf8   : > { %606 = vadd.xlane.f32.xlu1 %v605_v50 }
  0xf9   : > { %610 = vadd.xlane.f32.xlu2 %v609_v63 }
  0xfb   : > { %v1920_v59 = vpop.xlane.xlu1 %594 }
  0xfc   : > { %v1916_v33 = vpop.xlane.xlu2 %586 }
 0x100   : > { %618 = vadd.xlane.f32.xlu1 %v617_v39 }
 0x101   : > { %622 = vadd.xlane.f32.xlu2 %v621_v62 }
 0x104   : > { %v1922_v29 = vpop.xlane.xlu2 %598 }
 0x139   : > { %v357_v25 = vpop.xlane.xlu0 %356 }
 0x13a   : > { %1178 = vlog2.f32 %v357_v25 }
 0x13b   : > { %v349_v7 = vpop.xlane.xlu1 %348 }
 0x13c   : > { %1180 = vlog2.f32 %v349_v7 }
 0x140   : > { %v1179_v13 = vpop.eup %1178 }
 0x141   : > { %v415_v19 = vmul.f32 0.6931472, %v1179_v13  ;;  %v369_v31 = vpop.xlane.xlu0 %368 }
 0x142   : > { %v1181_v40 = vpop.eup %1180  ;;  %1182 = vlog2.f32 %v369_v31 }
 0x143   : > { %v411_v8 = vmul.f32 0.6931472, %v1181_v40  ;;  %v444_v2 = vadd.f32 %v415_v19, %v1733_v49  ;;  %v361_v54 = vpop.xlane.xlu1 %360 }
 0x144   : > { %v353_v32 = vpop.xlane.xlu2 %352  ;;  %1184 = vlog2.f32 %v361_v54 }
 0x145   : > { %v442_v37 = vadd.f32 %v411_v8, %v1735_v51  ;;  %v626_v3 = vsub.f32 %v444_v2, %v571_v47  ;;  %1186 = vlog2.f32 %v353_v32 }
 0x147   : > { %v624_v63 = vsub.f32 %v442_v37, %v563_v20  ;;  %v658_v50 = vsel %vm642_vm0, %v626_v3, 0.0  ;;  %vm654_vm0 = vcmp.lt.s32.totalorder %v1892_v55, 200 }
 0x148   : > { %v1183_v61 = vpop.eup %1182  ;;  %675 = vst.msk [vmem:[%s1929_s20 + $0x10] sm:$0xff] %vm672_vm3, %v658_v50 }
 0x149   : > { %v656_v49 = vsel %vm640_vm4, %v624_v63, 0.0  ;;  %v421_v41 = vmul.f32 0.6931472, %v1183_v61  ;;  %v381_v58 = vpop.xlane.xlu0 %380 }
 0x14a   : > { %v1185_v15 = vpop.eup %1184  ;;  %673 = vst.msk [vmem:[%s1929_s20] sm:$0xff] %vm672_vm3, %v656_v49  ;;  %1188 = vlog2.f32 %v381_v58 }
 0x14b   : > { %v1187_v51 = vpop.eup %1186  ;;  %v417_v24 = vmul.f32 0.6931472, %v1185_v15  ;;  %v447_v57 = vadd.f32 %v421_v41, %v1745_v16  ;;  %v373_v52 = vpop.xlane.xlu1 %372 }
 0x14c   : > { %v365_v56 = vpop.xlane.xlu2 %364  ;;  %v413_v62 = vmul.f32 0.6931472, %v1187_v51 }
 0x14d   : > { %1190 = vlog2.f32 %v365_v56  ;;  %v445_v39 = vadd.f32 %v417_v24, %v1751_v18  ;;  %v629_v20 = vsub.f32 %v447_v57, %v583_v45 }
 0x14e   : > { %1192 = vlog2.f32 %v373_v52  ;;  %v443_v47 = vadd.f32 %v413_v62, %v1753_v5 }
 0x14f   : > { %v627_v25 = vsub.f32 %v445_v39, %v575_v53  ;;  %v661_v16 = vsel %vm645_vm5, %v629_v20, 0.0 }
 0x150   : > { %v1189_v7 = vpop.eup %1188  ;;  %v625_v13 = vsub.f32 %v443_v47, %v1912_v26  ;;  %678 = vst.msk [vmem:[%s1929_s20 + $0x28] sm:$0xff] %vm672_vm3, %v661_v16 }
 0x151   : > { %v659_v28 = vsel %vm643_vm6, %v627_v25, 0.0  ;;  %v427_v19 = vmul.f32 0.6931472, %v1189_v7  ;;  %v393_v31 = vpop.xlane.xlu0 %392 }
 0x152   : > { %676 = vst.msk [vmem:[%s1929_s20 + $0x18] sm:$0xff] %vm672_vm3, %v659_v28  ;;  %v657_v45 = vsel %vm641_vm7, %v625_v13, 0.0 }
 0x153   : > { %v1191_v18 = vpop.eup %1190  ;;  %674 = vst.msk [vmem:[%s1929_s20 + $0x8] sm:$0xff] %vm672_vm3, %v657_v45  ;;  %v450_v23 = vadd.f32 %v427_v19, %v1768_v1  ;;  %v385_v53 = vpop.xlane.xlu1 %384 }
 0x154   : > { %v1193_v40 = vpop.eup %1192  ;;  %v419_v22 = vmul.f32 0.6931472, %v1191_v18  ;;  %v377_v5 = vpop.xlane.xlu2 %376 }
 0x155   : > { %v423_v26 = vmul.f32 0.6931472, %v1193_v40  ;;  %1194 = vlog2.f32 %v377_v5  ;;  %v632_v2 = vsub.f32 %v450_v23, %v1920_v59 }
 0x156   : > { %v446_v8 = vadd.f32 %v419_v22, %v1731_v42  ;;  %1196 = vlog2.f32 %v385_v53 }
 0x157   : > { %v448_v54 = vadd.f32 %v423_v26, %v1775_v6  ;;  %v664_v1 = vsel %vm648_vm8, %v632_v2, 0.0  ;;  %1198 = vlog2.f32 %v393_v31 }
 0x158   : > { %v628_v32 = vsub.f32 %v446_v8, %v1914_v43  ;;  %681 = vst.msk [vmem:[%s1929_s20 + $0x40] sm:$0xff] %vm672_vm3, %v664_v1 }
 0x159   : > { %v630_v37 = vsub.f32 %v448_v54, %v1916_v33  ;;  %v405_v59 = vpop.xlane.xlu0 %404 }
 0x15a   : > { %v660_v44 = vsel %vm644_vm9, %v628_v32, 0.0 }
 0x15b   : > { %v1195_v3 = vpop.eup %1194  ;;  %677 = vst.msk [vmem:[%s1929_s20 + $0x20] sm:$0xff] %vm672_vm3, %v660_v44  ;;  %v662_v42 = vsel %vm646_vm10, %v630_v37, 0.0  ;;  %v397_v43 = vpop.xlane.xlu1 %396 }
 0x15c   : > { %v1197_v63 = vpop.eup %1196  ;;  %679 = vst.msk [vmem:[%s1929_s20 + $0x30] sm:$0xff] %vm672_vm3, %v662_v42  ;;  %v425_v60 = vmul.f32 0.6931472, %v1195_v3  ;;  %v389_v6 = vpop.xlane.xlu2 %388 }
 0x15d   : > { %v429_v46 = vmul.f32 0.6931472, %v1197_v63  ;;  %1200 = vlog2.f32 %v389_v6  ;;  %v1199_v41 = vpop.eup %1198 }
 0x15e   : > { %v449_v33 = vadd.f32 %v425_v60, %v1777_v21  ;;  %1202 = vlog2.f32 %v397_v43 }
 0x15f   : > { %v451_v50 = vadd.f32 %v429_v46, %v1796_v4  ;;  %1204 = vlog2.f32 %v405_v59 }
 0x160   : > { %v631_v61 = vsub.f32 %v449_v33, %v1918_v38  ;;  %v433_v38 = vmul.f32 0.6931472, %v1199_v41 }
 0x161   : > { %v633_v49 = vsub.f32 %v451_v50, %v1922_v29  ;;  %v603_v24 = vpop.xlane.xlu0 %602 }
 0x162   : > { %v663_v58 = vsel %vm647_vm11, %v631_v61, 0.0  ;;  %v453_v47 = vadd.f32 %v433_v38, %v1789_v12 }
 0x163   : > { %v1201_v15 = vpop.eup %1200  ;;  %680 = vst.msk [vmem:[%s1929_s20 + $0x38] sm:$0xff] %vm672_vm3, %v663_v58  ;;  %v665_v51 = vsel %vm649_vm12, %v633_v49, 0.0  ;;  %v409_v4 = vpop.xlane.xlu1 %408 }
 0x164   : > { %v1203_v57 = vpop.eup %1202  ;;  %682 = vst.msk [vmem:[%s1929_s20 + $0x48] sm:$0xff] %vm672_vm3, %v665_v51  ;;  %v431_v48 = vmul.f32 0.6931472, %v1201_v15  ;;  %v401_v21 = vpop.xlane.xlu2 %400 }
 0x165   : > { %1206 = vlog2.f32 %v401_v21  ;;  %v435_v29 = vmul.f32 0.6931472, %v1203_v57  ;;  %v1205_v52 = vpop.eup %1204 }
 0x166   : > { %1208 = vlog2.f32 %v409_v4  ;;  %v452_v30 = vadd.f32 %v431_v48, %v1798_v0 }
 0x167   : > { %v454_v20 = vadd.f32 %v435_v29, %v1817_v34  ;;  %v439_v34 = vmul.f32 0.6931472, %v1205_v52 }
 0x168   : > { %v634_v56 = vsub.f32 %v452_v30, %v603_v24 }
 0x169   : > { %v615_v28 = vpop.xlane.xlu0 %614 }
 0x16a   : > { %v666_v62 = vsel %vm650_vm13, %v634_v56, 0.0 }
 0x16b   : > { %v1207_v39 = vpop.eup %1206  ;;  %683 = vst.msk [vmem:[%s1929_s20 + $0x50] sm:$0xff] %vm672_vm3, %v666_v62  ;;  %v607_v14 = vpop.xlane.xlu1 %606 }
 0x16c   : > { %v1209_v25 = vpop.eup %1208  ;;  %v437_v16 = vmul.f32 0.6931472, %v1207_v39  ;;  %v611_v0 = vpop.xlane.xlu2 %610  ;;  %v635_v13 = vsub.f32 %v453_v47, %v607_v14 }
 0x16d   : > { %v636_v7 = vsub.f32 %v454_v20, %v611_v0  ;;  %v441_v12 = vmul.f32 0.6931472, %v1209_v25 }
 0x16e   : > { %v455_v19 = vadd.f32 %v437_v16, %v1819_v35  ;;  %v667_v18 = vsel %vm651_vm15, %v635_v13, 0.0  ;;  %v456_v35 = vadd.f32 %v439_v34, %v1811_v11 }
 0x16f   : > { %v668_v31 = vsel %vm652_vm14, %v636_v7, 0.0  ;;  %684 = vst.msk [vmem:[%s1929_s20 + $0x58] sm:$0xff] %vm672_vm3, %v667_v18  ;;  %v457_v45 = vadd.f32 %v441_v12, %v1836_v36 }
 0x170   : > { %685 = vst.msk [vmem:[%s1929_s20 + $0x60] sm:$0xff] %vm672_vm3, %v668_v31  ;;  %v637_v10 = vsub.f32 %v455_v19, %v615_v28 }
 0x172   : > { %v669_v17 = vsel %vm653_vm1, %v637_v10, 0.0 }
 0x173   : > { %686 = vst.msk [vmem:[%s1929_s20 + $0x68] sm:$0xff] %vm672_vm3, %v669_v17  ;;  %v619_v40 = vpop.xlane.xlu1 %618 }
 0x174   : > { %v623_v27 = vpop.xlane.xlu2 %622  ;;  %v638_v23 = vsub.f32 %v456_v35, %v619_v40  ;;  %695 = sbr.rel (!%p1402_p8) target bundleno = 425 (0x1a9), region = 32 }
 0x175   : > { %v639_v22 = vsub.f32 %v457_v45, %v623_v27 }
 0x176   : > { %v670_v53 = vsel %vm654_vm0, %v638_v23, 0.0 }
 0x177   : > { %v671_v5 = vsel %vm655_vm2, %v639_v22, 0.0  ;;  %687 = vst.msk [vmem:[%s1929_s20 + $0x70] sm:$0xff] %vm672_vm3, %v670_v53 }
 0x178   : > { %688 = vst.msk [vmem:[%s1929_s20 + $0x78] sm:$0xff] %vm672_vm3, %v671_v5 }
 0x179   : > { %s2122_s12 = smov (!%p698_p7, %s697_s12), 16 }
 0x17a   : > { %s994_s13 = sshll.u32 %s2122_s12, 3 }
 0x17b   : > { %p997_p11 = scmp.eq.s32.totalorder %s994_s13, 0 }
 0x17c   : > { %s2011_s16 = sshrl.u32 (!%p997_p11), %s2122_s12, 4 }
 0x17d   : > { %706 = sbr.rel (%p997_p11) target bundleno = 425 (0x1a9), region = 36  ;;  %p998_p8 = scmp.le.s32.totalorder (!%p997_p11), %s2011_s16, 0 }
 0x182   : > { %929 = sbr.rel (%p998_p8) target bundleno = 408 (0x198), region = 118  ;;  %s2110_s10 = smov (!%p998_p8), %s2005_s4 }
 0x183   : > { %s2111_s17 = smov (!%p998_p8), %s1929_s20  ;;  %s2020_s18 = smov (!%p998_p8), 0  }
 0x184   : > { %s2022_s19 = smov (!%p998_p8), 0  }
 0x187 LB: >> { %v799_v11 = vld [vmem:[%s1323_s17] sm:$0xff]  ;;  %v801_v36 = vld [vmem:[%s1323_s17 + $0x8] sm:$0xff]  ;;  %v803_v9 = vld [vmem:[%s1323_s17 + $0x10] sm:$0xff]  ;;  %s831_s21 = sadd.s32 1, %s1327_s18  ;;  %s793_s19 = sadd.s32 1, %s1331_s19   ;;  %s1331_s19 = sphi %s2022_s19, %s793_s19   ;;  %s1327_s18 = sphi %s2020_s18, %s2114_s18   ;;  %s1323_s17 = sphi %s2111_s17, %s2113_s17   ;;  %s1319_s10 = sphi %s2110_s10, %s2112_s10  }
 0x188   : >> { %800 = vst [vmem:[%s1319_s10] sm:$0xff] %v799_v11  ;;  %v805_v55 = vld [vmem:[%s1323_s17 + $0x18] sm:$0xff]  ;;  %p832_p2 = scmp.ge.s32.totalorder %s831_s21, %s2011_s16  ;;  %v807_v26 = vld [vmem:[%s1323_s17 + $0x20] sm:$0xff]  ;;  %v809_v8 = vld [vmem:[%s1323_s17 + $0x28] sm:$0xff]  ;;  %p792_p3 = scmp.ge.s32.totalorder %s793_s19, %s2011_s16 }
 0x189   : >> { %802 = vst [vmem:[%s1319_s10 + $0x8] sm:$0xff] %v801_v36  ;;  %v811_v2 = vld [vmem:[%s1323_s17 + $0x30] sm:$0xff]  ;;  %v813_v54 = vld [vmem:[%s1323_s17 + $0x38] sm:$0xff]  ;;  %v815_v32 = vld [vmem:[%s1323_s17 + $0x40] sm:$0xff] }
 0x18a   : >> { %804 = vst [vmem:[%s1319_s10 + $0x10] sm:$0xff] %v803_v9  ;;  %s2124_s21 = smov (%p832_p2, %s831_s21), 0  ;;  %v817_v1 = vld [vmem:[%s1323_s17 + $0x48] sm:$0xff]  ;;  %v819_v37 = vld [vmem:[%s1323_s17 + $0x50] sm:$0xff]  ;;  %v821_v44 = vld [vmem:[%s1323_s17 + $0x58] sm:$0xff] }
 0x18b   : >> { %806 = vst [vmem:[%s1319_s10 + $0x18] sm:$0xff] %v805_v55  ;;  %s999_s22 = sshll.u32 %s2124_s21, 7  ;;  %v823_v3 = vld [vmem:[%s1323_s17 + $0x60] sm:$0xff]  ;;  %v825_v42 = vld [vmem:[%s1323_s17 + $0x68] sm:$0xff]  ;;  %v827_v59 = vld [vmem:[%s1323_s17 + $0x70] sm:$0xff]  ;;  %s2114_s18 = smov %s2124_s21 }
 0x18c   : >> { %808 = vst [vmem:[%s1319_s10 + $0x20] sm:$0xff] %v807_v26  ;;  %s836_s23 = scalar_lea.vmem %s1929_s20, %s999_s22 [#allocation4]   ;;  %s837_s25 = scalar_lea.vmem %s2005_s4, %s999_s22   ;;  %v829_v63 = vld [vmem:[%s1323_s17 + $0x78] sm:$0xff] }
 0x18d   : >> { %810 = vst [vmem:[%s1319_s10 + $0x28] sm:$0xff] %v809_v8  ;;  %s2113_s17 = smov %s836_s23 }
 0x18e   : >> { %812 = vst [vmem:[%s1319_s10 + $0x30] sm:$0xff] %v811_v2 }
 0x18f   : >> { %814 = vst [vmem:[%s1319_s10 + $0x38] sm:$0xff] %v813_v54 }
 0x190   : >> { %816 = vst [vmem:[%s1319_s10 + $0x40] sm:$0xff] %v815_v32 }
 0x191   : >> { %818 = vst [vmem:[%s1319_s10 + $0x48] sm:$0xff] %v817_v1 }
 0x192   : >> { %820 = vst [vmem:[%s1319_s10 + $0x50] sm:$0xff] %v819_v37 }
 0x193   : >> { %822 = vst [vmem:[%s1319_s10 + $0x58] sm:$0xff] %v821_v44  ;;  %795 = sbr.rel (!%p792_p3) target bundleno = 391 (0x187), region = 124 }
 0x194   : >> { %824 = vst [vmem:[%s1319_s10 + $0x60] sm:$0xff] %v823_v3 }
 0x195   : >> { %826 = vst [vmem:[%s1319_s10 + $0x68] sm:$0xff] %v825_v42 }
 0x196   : >> { %828 = vst [vmem:[%s1319_s10 + $0x70] sm:$0xff] %v827_v59 }
 0x197   : >> { %830 = vst [vmem:[%s1319_s10 + $0x78] sm:$0xff] %v829_v63  ;;  %s2112_s10 = smov %s837_s25 }
 0x198 PF: > { %s2084_s27 = sand.u32 15, %s2122_s12   ;;  %s1013_s28 = sshll.u32 %s2011_s16, 7 }
 0x199   : > { %s842_s29 = scalar_lea.vmem %s1929_s20, %s1013_s28 [#allocation4]   ;;  %s844_s30 = scalar_lea.vmem %s2005_s4, %s1013_s28  }
 0x19a   : > { %p1004_p4 = scmp.le.s32.totalorder %s2084_s27, 0 }
 0x19b   : > { %s1333_s5 = smov (!%p1004_p4), %s844_s30   ;;  %s1337_s6 = smov (!%p1004_p4), %s842_s29  }
 0x19c   : > { %943 = sbr.rel (%p1004_p4) target bundleno = 425 (0x1a9), region = 129  ;;  %s1341_s26 = smov (!%p1004_p4), 0  }
 0x19d   : > { %s1345_s9 = smov (!%p1004_p4), 0  }
 0x1a1 LB: >> { %v854_v60 = vld [vmem:[%s1339_s6] sm:$0xff]  ;;  %s856_s15 = sadd.s32 1, %s1343_s26  ;;  %s848_s9 = sadd.s32 1, %s1347_s9   ;;  %s1347_s9 = sphi %s1345_s9, %s848_s9   ;;  %s1343_s26 = sphi %s1341_s26, %s1342_s26   ;;  %s1339_s6 = sphi %s1337_s6, %s861_s6   ;;  %s1335_s5 = sphi %s1333_s5, %s862_s5  }
 0x1a2   : >> { %855 = vst [vmem:[%s1335_s5] sm:$0xff] %v854_v60  ;;  %p857_p5 = scmp.ge.s32.totalorder %s856_s15, %s2084_s27  ;;  %p847_p6 = scmp.ge.s32.totalorder %s848_s9, %s2084_s27 }
 0x1a4   : >> { %s2126_s15 = smov (%p857_p5, %s856_s15), 0  ;;  %850 = sbr.rel (!%p847_p6) target bundleno = 417 (0x1a1), region = 135 }
 0x1a5   : >> { %s1005_s20 = sshll.u32 %s2126_s15, 3  ;;  %s1342_s26 = smov %s2126_s15  }
 0x1a6   : >> { %s861_s6 = scalar_lea.vmem %s842_s29, %s1005_s20 [#allocation4]   ;;  %s862_s5 = scalar_lea.vmem %s844_s30, %s1005_s20  }
 0x1a9 PF: > { %p11_p9 = scmp.ge.s32.totalorder %s1384_s11, 4   ;;  %s2115_s6 = smov %s1307_s7 }
 0x1aa   : > { %s2116_s7 = smov %s1311_s8  ;;  %s2117_s8 = smov %s1394_s14 }
 0x1ab   : > { %s2118_s9 = smov %s1384_s11  ;;  %13 = sbr.rel (!%p11_p9) target bundleno = 3 (0x3), region = 146 }
 0x1b0   :  { %878 = vsyncpa [#allocation3], 1 }
 0x1b1   :  { %880 = vsyncpa [#allocation3 + $0x1], 1 }

</bundles_post_ra>
